<compile_context>
chip_gen: v7x
topology: tpu7x:2x2x1
jax: 0.10.0
libtpu: 0.0.40
codegen_flags: <defaults>
</compile_context>

<pallas_src>
import jax
import jax.numpy as jnp
from jax.experimental import pallas as pl
from jax.experimental.pallas import tpu as pltpu


def _round_up(n, m):
    return ((n + m - 1) // m) * m


def _vmem_budget_bytes():
    """Usable VMEM budget for this kernel (leave headroom for the compiler)."""
    try:
        cap = int(pltpu.get_tpu_info().vmem_capacity_bytes)
        return min((cap * 3) // 4, 100 << 20)   # ~96 MiB on v5e/v6e, ~48 MiB on v7x
    except Exception:
        return 32 << 20                         # conservative fallback


def fork_kernel(x_ref, w_ref, b_ref, lin_ref, tanh_ref):
    """One (batch-tile, out-lane-tile) grid step.

    Branches 0+1 (the two Linears) are ONE fused MXU matmul against the
    concatenated weight tile; branch 2 (Tanh, EUP slot) does not depend on the
    out-lane axis, so it is written only on the first N-tile.
    """
    j = pl.program_id(1)

    x = x_ref[...]
    y = jnp.dot(x, w_ref[...], preferred_element_type=jnp.float32)
    lin_ref[...] = (y + b_ref[...]).astype(lin_ref.dtype)   # bias already f32

    @pl.when(j == 0)
    def _():
        # Native-dtype tanh: bf16 EUP on v6e/v7x, f32 otherwise.
        tanh_ref[...] = jnp.tanh(x).astype(tanh_ref.dtype)


def prepare_fork_params(w1, b1, w2, b2, vmem_budget=None):
    """Build fused / padded parameters ONCE (hoisted out of the forward path)."""
    if vmem_budget is None:
        vmem_budget = _vmem_budget_bytes()

    D, O1 = w1.shape
    O2 = w2.shape[1]
    dtype = w1.dtype
    itemsize = jnp.dtype(dtype).itemsize

    Dp = _round_up(D, 128)
    O1p = _round_up(O1, 128)        # lane-aligned start of the y2 columns
    O2p = _round_up(O2, 128)
    Of = O1p + O2p

    # Out-lane tile TN: fully-resident fused weight when (double-buffered) it
    # fits in half the VMEM budget, else the largest 128-multiple tile that
    # does (needed on v7x where physical VMEM is 64 MiB).
    tn_cands = [Of] + [t for t in (2048, 1024, 512, 256, 128) if t < Of]
    TN = 128
    for t in tn_cands:
        if 2 * Dp * t * itemsize <= vmem_budget // 2:
            TN = t
            break
    Ofg = _round_up(Of, TN)

    # Fused, zero-padded operands.  Zero pad-lanes contribute nothing to the
    # matmul and are sliced away in the wrapper.
    w_p = (jnp.zeros((Dp, Ofg), dtype)
           .at[:D, :O1].set(w1)
           .at[:D, O1p:O1p + O2].set(w2))
    b_p = (jnp.zeros((1, Ofg), jnp.float32)          # pre-cast to f32
           .at[:, :O1].set(b1.reshape(1, O1).astype(jnp.float32))
           .at[:, O1p:O1p + O2].set(b2.reshape(1, O2).astype(jnp.float32)))

    meta = dict(D=D, Dp=Dp, O1=O1, O1p=O1p, O2=O2, TN=TN, Ofg=Ofg,
                vmem_budget=int(vmem_budget))
    return w_p, b_p, meta


def fork_forward(x, w_p, b_p, meta):
    B, D = x.shape
    assert D == meta["D"]
    Dp, O1, O1p, O2, TN, Ofg = (meta["Dp"], meta["O1"], meta["O1p"],
                                meta["O2"], meta["TN"], meta["Ofg"])
    budget = meta["vmem_budget"]
    dtype = x.dtype
    itemsize = jnp.dtype(dtype).itemsize

    # --- choose the batch tile TB against the VMEM budget -------------------
    def need_bytes(tb):
        return (itemsize * (2 * tb * Dp          # x (double-buffered)
                            + 2 * tb * TN        # fused-linear out
                            + 2 * tb * Dp        # tanh out
                            + 2 * Dp * TN)       # weight tile (double-buffered)
                + 4 * (2 * 8 * TN))              # f32 bias (8-sublane padded)

    rb = _round_up(B, 8)
    cands = [t for t in (1024, 512, 256, 128) if t <= rb] or [rb]
    fitting = [t for t in cands if need_bytes(t) <= budget] or [cands[-1]]
    divisors = [t for t in fitting if B % t == 0]
    TB = divisors[0] if divisors else fitting[0]    # lists are descending
    Bp = _round_up(B, TB)

    # --- fast path: skip the x pad copy when already aligned ----------------
    if Bp == B and Dp == D:
        x_p = x
    else:
        x_p = jnp.zeros((Bp, Dp), dtype).at[:B, :D].set(x)

    vmem_limit = int(min(max(need_bytes(TB) * 5 // 4 + (1 << 20), 4 << 20), budget))

    # TODO(synk): on v7x use pltpu.CORE_PARALLEL on the batch axis (2 TCs/chip);
    # "parallel" kept here for portability across v5e/v6e/v7x.
    lin, tnh = pl.pallas_call(
        fork_kernel,
        out_shape=(
            jax.ShapeDtypeStruct((Bp, Ofg), dtype),   # fused Linear outputs
            jax.ShapeDtypeStruct((Bp, Dp), dtype),    # tanh output
        ),
        grid=(Bp // TB, Ofg // TN),
        in_specs=[
            pl.BlockSpec((TB, Dp), lambda i, j: (i, 0)),   # x: tiled on batch
            pl.BlockSpec((Dp, TN), lambda i, j: (0, j)),   # fused weight tile
            pl.BlockSpec((1, TN), lambda i, j: (0, j)),    # fused bias (f32)
        ],
        out_specs=(
            pl.BlockSpec((TB, TN), lambda i, j: (i, j)),
            pl.BlockSpec((TB, Dp), lambda i, j: (i, 0)),   # resident across j
        ),
        compiler_params=pltpu.CompilerParams(
            dimension_semantics=("parallel", "arbitrary"),
            vmem_limit_bytes=vmem_limit,
        ),
    )(x_p, w_p, b_p)

    # Lane-aligned slices back to the original branch outputs (Fork → tuple).
    # TODO(synk): if downstream can consume the fused [B, Ofg] slab directly,
    # skip these slices to save one output-sized HBM round-trip.
    y1 = lin[:B, :O1]
    y2 = lin[:B, O1p:O1p + O2]
    y3 = tnh[:B, :D]
    return (y1, y2, y3)


if __name__ == "__main__":
    B, D, O1, O2 = 4, 32, 64, 16

    key = jax.random.PRNGKey(0)
    kx, kw1, kb1, kw2, kb2 = jax.random.split(key, 5)

    x = jax.random.normal(kx, (B, D), dtype=jnp.float32)
    # PyTorch Linear weight [O, D] stored transposed as [D, O].
    w1 = jax.random.normal(kw1, (D, O1), dtype=jnp.float32) * 0.05
    b1 = jax.random.normal(kb1, (1, O1), dtype=jnp.float32) * 0.05
    w2 = jax.random.normal(kw2, (D, O2), dtype=jnp.float32) * 0.05
    b2 = jax.random.normal(kb2, (1, O2), dtype=jnp.float32) * 0.05

    # Parameter prep happens ONCE (not per forward call).
    w_p, b_p, meta = prepare_fork_params(w1, b1, w2, b2)
    jax.block_until_ready((w_p, b_p))

    y1, y2, y3 = fork_forward(x, w_p, b_p, meta)
    jax.block_until_ready((y1, y2, y3))

    # Reference check (plain JAX) for Fork semantics.
    r1 = x @ w1 + b1
    r2 = x @ w2 + b2
    r3 = jnp.tanh(x)
    assert y1.shape == (B, O1) and y2.shape == (B, O2) and y3.shape == (B, D)
    assert jnp.allclose(y1, r1, atol=1e-5)
    assert jnp.allclose(y2, r2, atol=1e-5)
    assert jnp.allclose(y3, r3, atol=1e-5)

    print("KERNEL_OK")
</pallas_src>

<mosaic_0001>
module attributes {stable_mosaic.version = 11 : i64} {
  func.func @fork_kernel(%arg0: i32, %arg1: i32, %arg2: memref<8x128xf32, #tpu.memory_space<vmem>>, %arg3: memref<128x256xf32, #tpu.memory_space<vmem>>, %arg4: memref<1x256xf32, #tpu.memory_space<vmem>>, %arg5: memref<8x256xf32, #tpu.memory_space<vmem>>, %arg6: memref<8x128xf32, #tpu.memory_space<vmem>>) attributes {dimension_semantics = [#tpu.dimension_semantics<parallel>, #tpu.dimension_semantics<arbitrary>], iteration_bounds = array<i64: 1, 1>, scalar_prefetch = 0 : i64, scratch_operands = 0 : i64, tpu.core_type = #tpu.core_type<tc>, window_params = [{transform_indices = @transform_0, window_bounds = array<i64: 8, 128>}, {transform_indices = @transform_1, window_bounds = array<i64: 128, 256>}, {transform_indices = @transform_2, window_bounds = array<i64: 1, 256>}, {transform_indices = @transform_3, window_bounds = array<i64: 8, 256>}, {transform_indices = @transform_4, window_bounds = array<i64: 8, 128>}]} {
    %c0 = arith.constant 0 : index
    %c0_0 = arith.constant 0 : index
    %0 = vector.load %arg2[%c0, %c0_0] : memref<8x128xf32, #tpu.memory_space<vmem>>, vector<8x128xf32>
    %c0_1 = arith.constant 0 : index
    %c0_2 = arith.constant 0 : index
    %1 = vector.load %arg3[%c0_1, %c0_2] : memref<128x256xf32, #tpu.memory_space<vmem>>, vector<128x256xf32>
    %cst = arith.constant dense<0.000000e+00> : vector<8x256xf32>
    %2 = tpu.matmul %0, %1, %cst {dimension_numbers = #tpu.dot_dimension_numbers<[1], [0], [0], [1], [0, 0, 1, 1], [], []>} : vector<8x128xf32>, vector<128x256xf32>, vector<8x256xf32> -> vector<8x256xf32>
    %c0_3 = arith.constant 0 : index
    %c0_4 = arith.constant 0 : index
    %3 = vector.load %arg4[%c0_3, %c0_4] : memref<1x256xf32, #tpu.memory_space<vmem>>, vector<1x256xf32>
    %4 = vector.broadcast %3 : vector<1x256xf32> to vector<8x256xf32>
    %5 = arith.addf %2, %4 : vector<8x256xf32>
    %c0_5 = arith.constant 0 : index
    %c0_6 = arith.constant 0 : index
    %6 = vector.load %arg5[%c0_5, %c0_6] : memref<8x256xf32, #tpu.memory_space<vmem>>, vector<8x256xf32>
    tpu.vector_store %arg5[%c0_5, %c0_6], %5 {strides = array<i32>} : memref<8x256xf32, #tpu.memory_space<vmem>>, vector<8x256xf32>,
    %c0_i32 = arith.constant 0 : i32
    %7 = arith.cmpi eq, %arg1, %c0_i32 : i32
    %8 = arith.extui %7 : i1 to i32
    %c0_i32_7 = arith.constant 0 : i32
    %9 = arith.cmpi ne, %8, %c0_i32_7 : i32
    scf.if %9 {
      %10 = math.tanh %0 : vector<8x128xf32>
      %c0_8 = arith.constant 0 : index
      %c0_9 = arith.constant 0 : index
      %11 = vector.load %arg6[%c0_8, %c0_9] : memref<8x128xf32, #tpu.memory_space<vmem>>, vector<8x128xf32>
      tpu.vector_store %arg6[%c0_8, %c0_9], %10 {strides = array<i32>} : memref<8x128xf32, #tpu.memory_space<vmem>>, vector<8x128xf32>,
    } else {
    }
    return
  }
  func.func @transform_0(%arg0: i32, %arg1: i32) -> (i32, i32) {
    %c0_i32 = arith.constant 0 : i32
    %c0_i32_0 = arith.constant 0 : i32
    return %arg0, %c0_i32 : i32, i32
  }
  func.func @transform_1(%arg0: i32, %arg1: i32) -> (i32, i32) {
    %c0_i32 = arith.constant 0 : i32
    %c0_i32_0 = arith.constant 0 : i32
    return %c0_i32, %arg1 : i32, i32
  }
  func.func @transform_2(%arg0: i32, %arg1: i32) -> (i32, i32) {
    %c0_i32 = arith.constant 0 : i32
    %c0_i32_0 = arith.constant 0 : i32
    return %c0_i32, %arg1 : i32, i32
  }
  func.func @transform_3(%arg0: i32, %arg1: i32) -> (i32, i32) {
    %c0_i32 = arith.constant 0 : i32
    return %arg0, %arg1 : i32, i32
  }
  func.func @transform_4(%arg0: i32, %arg1: i32) -> (i32, i32) {
    %c0_i32 = arith.constant 0 : i32
    %c0_i32_0 = arith.constant 0 : i32
    return %arg0, %c0_i32 : i32, i32
  }
}

</mosaic_0001>

<bundles_post_ra>
// kernel: tpu_custom_call.1
= control target key start
LH: loop header
LB: loop body
LE: loop exit
PB: predicated region body
PF: predicated region fallthrough
CT: control target
= control target key end

     0   :  { %10 = vsyncpa [#allocation3], 0  ;;  %s425_s0 = inlined_call_operand.hbm [shape: f32[8,128], index: 0, kind: input, shape index: {}]   ;;  %s426_s1 = inlined_call_operand.hbm [shape: f32[128,256], index: 1, kind: input, shape index: {}]   ;;  %s427_s2 = inlined_call_operand.vmem [shape: f32[1,256], index: 2, kind: input, shape index: {}]   ;;  %s428_s3 = inlined_call_operand.hbm [shape: f32[8,256], index: 3, kind: output, shape index: {0}]   ;;  %s429_s4 = inlined_call_operand.hbm [shape: f32[8,128], index: 4, kind: output, shape index: {1}]  }
   0x1   :  { %11 = vsyncpa [#allocation6], 0 }
   0x2   :  { %12 = vsyncpa [#allocation4], 0 }
   0x3   :  { %13 = vsyncpa [#allocation9], 0  ;;  %s335_s15 = smov [#allocation2]   ;;  %s336_s17 = smov [#allocation5]  }
   0x4   :  { %s20_s16 = sshll.u32 %s335_s15, 4  ;;  %s29_s18 = sshll.u32 %s336_s17, 4  ;;  %s21_s16 = int_to_ptr.vmem [resolvable:$true] %s20_s16  ;;  %s367_s18 = int_to_ptr.vmem [resolvable:$true] %s29_s18 }
   0x5   :  { %s239_s21 = scalar_lea.hbm %s425_s0, 128 }
   0x6   :  { %p240_p0 = scmp.ne.s32.totalorder %s425_s0, %s239_s21  ;;  %p243_p1 = scmp.lt.u32.totalorder %s239_s21, %s425_s0 }
   0x8   :  { %p245_p2 = pnand %p243_p1, %p240_p0 }
   0xa   :  { %248 = shalt.err (!%p245_p2)
}
   0xb   :  { %s249_s26 = scalar_lea.vmem %s21_s16, 128  ;;  %p254_p4 = scmp.lt.s32.totalorder %s21_s16, %s21_s16 }
   0xc   :  { %p250_p3 = scmp.ne.s32.totalorder %s21_s16, %s249_s26  ;;  %p255_p5 = scmp.lt.s32.totalorder %s249_s26, %s249_s26 }
   0xe   :  { %p256_p6 = por %p255_p5, %p254_p4 }
  0x10   :  { %p257_p7 = pnand %p256_p6, %p250_p3 }
  0x12   :  { %260 = shalt.err (!%p257_p7)
}
  0x13   :  { %23 = dma.hbm_to_vmem [thread:$0]  %s425_s0, 128, %s21_s16, [#allocation3]  }
  0x14   :  { %s261_s5 = scalar_lea.hbm %s426_s1, 4096 }
  0x15   :  { %p262_p8 = scmp.ne.s32.totalorder %s426_s1, %s261_s5  ;;  %p265_p9 = scmp.lt.u32.totalorder %s261_s5, %s426_s1 }
  0x17   :  { %p267_p10 = pnand %p265_p9, %p262_p8 }
  0x19   :  { %270 = shalt.err (!%p267_p10)
}
  0x1a   :  { %s271_s10 = scalar_lea.vmem %s367_s18, 4096  ;;  %p276_p12 = scmp.lt.s32.totalorder %s367_s18, %s367_s18 }
  0x1b   :  { %p272_p11 = scmp.ne.s32.totalorder %s367_s18, %s271_s10  ;;  %p277_p13 = scmp.lt.s32.totalorder %s271_s10, %s271_s10 }
  0x1d   :  { %p278_p0 = por %p277_p13, %p276_p12 }
  0x1f   :  { %p279_p1 = pnand %p278_p0, %p272_p11 }
  0x21   :  { %282 = shalt.err (!%p279_p1)
}
  0x22   :  { %s337_s0 = smov 256   ;;  %s338_s11 = smov 16  }
  0x23   :  { %35 = dma.hbm_to_vmem [thread:$0]  %s426_s1, 4096, %s367_s18, [#allocation6], %s337_s0, %s337_s0, %s338_s11  }
  0x24   :  { %327 = dma.done.wait [#allocation3], 128  }
  0x25   :  { %328 = vsyncadd [#allocation3], 4294967168 }
  0x26   :  { %329 = dma.done.wait [#allocation6], 4096  }
  0x27   :  { %330 = vsyncadd [#allocation6], 4294963200  ;;  %v339_v0 = vmov 0.0   ;;  %v46_v1 = vld [vmem:[#allocation5 + $0x8] sm:$0xff]  ;;  %v48_v2 = vld [vmem:[#allocation5 + $0x18] sm:$0xff]  ;;  %s340_s1 = smov [#allocation8]  }
  0x28   :  { %153 = vmatprep.mubr.f32.mxu0 %v339_v0  ;;  %v45_v3 = vld [vmem:[#allocation5] sm:$0xff]  ;;  %v198_v4 = vpack.c.bf16 %v48_v2, %v46_v1  ;;  %v47_v5 = vld [vmem:[#allocation5 + $0x10] sm:$0xff]  ;;  %v50_v6 = vld [vmem:[#allocation5 + $0x28] sm:$0xff]  ;;  %s184_s14 = sshll.u32 %s340_s1, 4  ;;  %s185_s14 = int_to_ptr.vmem [resolvable:$true] %s184_s14 }
  0x29   :  { %v52_v7 = vld [vmem:[#allocation5 + $0x38] sm:$0xff]  ;;  %v200_v8 = vpack.c.bf16 %v47_v5, %v45_v3  ;;  %v49_v10 = vld [vmem:[#allocation5 + $0x20] sm:$0xff]  ;;  %v51_v11 = vld [vmem:[#allocation5 + $0x30] sm:$0xff]  ;;  %s283_s15 = scalar_lea.vmem %s185_s14, 128  ;;  %p288_p3 = scmp.lt.s32.totalorder %s185_s14, %s185_s14 }
  0x2a   :  { %v202_v9 = vpack.c.bf16 %v52_v7, %v50_v6  ;;  %v54_v12 = vld [vmem:[#allocation5 + $0x48] sm:$0xff]  ;;  %199 = vmatprep.subr.bf16.mxu0 %v198_v4  ;;  %v56_v13 = vld [vmem:[#allocation5 + $0x58] sm:$0xff]  ;;  %v204_v14 = vpack.c.bf16 %v51_v11, %v49_v10  ;;  %v53_v16 = vld [vmem:[#allocation5 + $0x40] sm:$0xff]  ;;  %p284_p2 = scmp.ne.s32.totalorder %s185_s14, %s283_s15  ;;  %p289_p4 = scmp.lt.s32.totalorder %s283_s15, %s283_s15 }
  0x2b   :  { %201 = vmatpush1.bf16.msra.mxu0 %v200_v8  ;;  %v206_v15 = vpack.c.bf16 %v56_v13, %v54_v12  ;;  %v55_v17 = vld [vmem:[#allocation5 + $0x50] sm:$0xff]  ;;  %v58_v18 = vld [vmem:[#allocation5 + $0x68] sm:$0xff]  ;;  %v60_v19 = vld [vmem:[#allocation5 + $0x78] sm:$0xff] }
  0x2c   :  { %203 = vmatprep.subr.bf16.mxu0 %v202_v9  ;;  %v208_v20 = vpack.c.bf16 %v55_v17, %v53_v16  ;;  %v210_v21 = vpack.c.bf16 %v60_v19, %v58_v18  ;;  %v57_v22 = vld [vmem:[#allocation5 + $0x60] sm:$0xff]  ;;  %v59_v23 = vld [vmem:[#allocation5 + $0x70] sm:$0xff]  ;;  %v62_v24 = vld [vmem:[#allocation5 + $0x88] sm:$0xff]  ;;  %p290_p5 = por %p289_p4, %p288_p3 }
  0x2d   :  { %v64_v25 = vld [vmem:[#allocation5 + $0x98] sm:$0xff]  ;;  %v212_v27 = vpack.c.bf16 %v59_v23, %v57_v22  ;;  %v61_v29 = vld [vmem:[#allocation5 + $0x80] sm:$0xff]  ;;  %v63_v30 = vld [vmem:[#allocation5 + $0x90] sm:$0xff] }
  0x2e   :  { %v44_v26 = vld [vmem:[#allocation2] sm:$0xff]  ;;  %v214_v28 = vpack.c.bf16 %v64_v25, %v62_v24  ;;  %v66_v31 = vld [vmem:[#allocation5 + $0xa8] sm:$0xff]  ;;  %v216_v33 = vpack.c.bf16 %v63_v30, %v61_v29  ;;  %v65_v35 = vld [vmem:[#allocation5 + $0xa0] sm:$0xff]  ;;  %p291_p6 = pnand %p290_p5, %p284_p2 }
  0x2f   :  { %205 = vmatpush1.bf16.msra.mxu0 %v204_v14  ;;  %237 = vtanh.f32 %v44_v26  ;;  %v68_v32 = vld [vmem:[#allocation5 + $0xb8] sm:$0xff]  ;;  %v67_v36 = vld [vmem:[#allocation5 + $0xb0] sm:$0xff]  ;;  %v70_v37 = vld [vmem:[#allocation5 + $0xc8] sm:$0xff] }
  0x30   :  { %207 = vmatprep.subr.bf16.mxu0 %v206_v15  ;;  %v218_v34 = vpack.c.bf16 %v68_v32, %v66_v31  ;;  %v72_v38 = vld [vmem:[#allocation5 + $0xd8] sm:$0xff]  ;;  %v220_v39 = vpack.c.bf16 %v67_v36, %v65_v35  ;;  %v69_v42 = vld [vmem:[#allocation5 + $0xc0] sm:$0xff]  ;;  %v71_v43 = vld [vmem:[#allocation5 + $0xd0] sm:$0xff] }
  0x31   :  { %v222_v41 = vpack.c.bf16 %v72_v38, %v70_v37  ;;  %v74_v44 = vld [vmem:[#allocation5 + $0xe8] sm:$0xff]  ;;  %v76_v45 = vld [vmem:[#allocation5 + $0xf8] sm:$0xff]  ;;  %v224_v46 = vpack.c.bf16 %v71_v43, %v69_v42  ;;  %v73_v48 = vld [vmem:[#allocation5 + $0xe0] sm:$0xff] }
  0x32   :  { %v226_v47 = vpack.c.bf16 %v76_v45, %v74_v44  ;;  %v75_v49 = vld [vmem:[#allocation5 + $0xf0] sm:$0xff] }
  0x33   :  { %209 = vmatpush1.bf16.msra.mxu0 %v208_v20  ;;  %v228_v50 = vpack.c.bf16 %v75_v49, %v73_v48 }
  0x34   :  { %211 = vmatprep.subr.bf16.mxu0 %v210_v21 }
  0x37   :  { %213 = vmatpush1.bf16.msra.mxu0 %v212_v27 }
  0x38   :  { %215 = vmatprep.subr.bf16.mxu0 %v214_v28 }
  0x39   :  { %v238_v40 = vpop.eup %237 }
  0x3a   :  { %167 = vst [vmem:[#allocation8] sm:$0xff] %v238_v40 }
  0x3b   :  { %217 = vmatpush1.bf16.msra.mxu0 %v216_v33 }
  0x3c   :  { %219 = vmatprep.subr.bf16.mxu0 %v218_v34 }
  0x3f   :  { %221 = vmatpush1.bf16.msra.mxu0 %v220_v39 }
  0x40   :  { %223 = vmatprep.subr.bf16.mxu0 %v222_v41 }
  0x43   :  { %225 = vmatpush1.bf16.msra.mxu0 %v224_v46 }
  0x44   :  { %227 = vmatprep.subr.bf16.mxu0 %v226_v47 }
  0x47   :  { %229 = vmatpush1.bf16.msra.mxu0 %v228_v50 }
  0x4a   :  { %154 = vmatmul.mubr.f32.vlgmr.msra.gmra.mrb[0].mxu0 %v44_v26 }
  0x4b   :  { %294 = shalt.err (!%p291_p6)
}
  0x4c   :  { %s295_s18 = scalar_lea.hbm %s429_s4, 128 }
  0x4d   :  { %p296_p7 = scmp.ne.s32.totalorder %s429_s4, %s295_s18  ;;  %p299_p8 = scmp.lt.u32.totalorder %s295_s18, %s429_s4 }
  0x4f   :  { %p301_p9 = pnand %p299_p8, %p296_p7 }
  0x51   :  { %304 = shalt.err (!%p301_p9)
}
  0x52   :  { %187 = dma.vmem_to_hbm [thread:$0]  %s185_s14, 128, %s429_s4, [#allocation9]   ;;  %v79_v51 = vlaneseq  ;;  %v77_v54 = vld [vmem:[%s427_s2] sm:$0x3] }
  0x53   :  { %s341_s27 = smov [#allocation7]  }
  0x54   :  { %v80_v52 = vshrl.u32 %v79_v51, 7  ;;  %s174_s28 = sshll.u32 %s341_s27, 4  ;;  %s175_s28 = int_to_ptr.vmem [resolvable:$true] %s174_s28 }
  0x55   :  { %s305_s4 = scalar_lea.vmem %s175_s28, 256  ;;  %p310_p11 = scmp.lt.s32.totalorder %s175_s28, %s175_s28 }
  0x56   :  { %v81_v53 = vsub.s32 0, %v80_v52  ;;  %v85_v55 = vsub.s32 1, %v80_v52  ;;  %p306_p10 = scmp.ne.s32.totalorder %s175_s28, %s305_s4  ;;  %p311_p12 = scmp.lt.s32.totalorder %s305_s4, %s305_s4 }
  0x58   :  { %v82_v56 = vrot.slane %v77_v54, %v81_v53  ;;  %v86_v57 = vrot.slane %v77_v54, %v85_v55  ;;  %p312_p13 = por %p311_p12, %p310_p11 }
  0x5a   :  { %p313_p0 = pnand %p312_p13, %p306_p10 }
 0x11d   :  { %v155_v58 = vpop.f32.mrb[0].mxu0 }
 0x11e   :  { %v156_v59 = vadd.f32 %v155_v58, %v82_v56  ;;  %v157_v60 = vpop.f32.mrb[1].mxu0 }
 0x11f   :  { %v158_v61 = vadd.f32 %v157_v60, %v86_v57 }
 0x120   :  { %160 = vst [vmem:[#allocation7] sm:$0xff] %v156_v59 }
 0x121   :  { %161 = vst [vmem:[#allocation7 + $0x8] sm:$0xff] %v158_v61 }
 0x122   :  { %316 = shalt.err (!%p313_p0)
}
 0x123   :  { %s317_s30 = scalar_lea.hbm %s428_s3, 256 }
 0x124   :  { %p318_p1 = scmp.ne.s32.totalorder %s428_s3, %s317_s30  ;;  %p321_p2 = scmp.lt.u32.totalorder %s317_s30, %s428_s3 }
 0x126   :  { %p323_p3 = pnand %p321_p2, %p318_p1 }
 0x128   :  { %326 = shalt.err (!%p323_p3)
}
 0x129   :  { %177 = dma.vmem_to_hbm [thread:$0]  %s175_s28, 256, %s428_s3, [#allocation4]  }
 0x12a   :  { %331 = dma.done.wait [#allocation4], 256  }
 0x12b   :  { %332 = vsyncadd [#allocation4], 4294967040 }
 0x12c   :  { %333 = dma.done.wait [#allocation9], 128  }
 0x12d   :  { %334 = vsyncadd [#allocation9], 4294967168 }
 0x12e   :  { %194 = vsyncpa [#allocation3], 1 }
 0x12f   :  { %195 = vsyncpa [#allocation6], 1 }
 0x130   :  { %196 = vsyncpa [#allocation4], 1 }
 0x131   :  { %197 = vsyncpa [#allocation9], 1 }

</bundles_post_ra>
